<compile_context>
chip_gen: v6e
topology: v6e:2x2x1
jax: 0.10.0
libtpu: 0.0.40
codegen_flags: <defaults>
</compile_context>

<pallas_src>
import jax
import jax.numpy as jnp
from jax.experimental import pallas as pl
from jax.experimental.pallas import tpu as pltpu

LANES = 128
X_DIM = 78           # feature width
Y_DIM = 9            # one-hot label width
MU_DIM = 3
MU_OFF = X_DIM + Y_DIM   # 87: lane offset where mu lives in the shared slab
N_W = 10             # padded 128x128 weight matrices (encoder 4 + decoder 6)
N_B = 10             # padded 128-lane bias rows
MAX_TILE = 1024      # max batch-tile rows per grid step


def _round_up(v, m):
    return ((v + m - 1) // m) * m


def _softplus(x):
    # Numerically stable softplus (matches torch.nn.Softplus), computed in f32.
    return jnp.maximum(x, 0.0) + jnp.log1p(jnp.exp(-jnp.abs(x)))


# ------------------------------- kernel --------------------------------------


def cvae2_kernel(x_ref, y_ref, w_ref, b_ref, out_ref, xy_s):
    """One batch tile of the full CVAE2 forward.

    x_ref  : (BT, 78)  f32
    y_ref  : (BT, 9)   f32
    w_ref  : (10, 128, 128) bf16 padded weight slab (VMEM-resident, constant map)
    b_ref  : (10, 128)      f32  padded bias slab
    out_ref: (BT, 128) f32, reconstruction in lanes 0:78, exact zeros after
    xy_s   : (BT, 128) f32 VMEM scratch: x in lanes 0:78, y in lanes 78:87
    """
    # Assemble lane-dense [x | y | 0] slab in VMEM.  Cost: ~BT/8 vreg stores,
    # negligible next to the 10 matmuls.
    xy_s[...] = jnp.zeros_like(xy_s)
    xy_s[:, 0:X_DIM] = x_ref[...]
    xy_s[:, X_DIM:MU_OFF] = y_ref[...]
    xy = xy_s[...]

    def layer(h, i, act):
        # bf16 operands on the MXU, f32 accumulate; bias add + softplus in f32.
        z = jnp.dot(h.astype(jnp.bfloat16), w_ref[i],
                    preferred_element_type=jnp.float32) + b_ref[i:i + 1, :]
        return _softplus(z) if act else z

    # ---- encoder: l_z_xy(cat(x, y)) ----
    h = layer(xy, 0, True)            # 87 -> 60  (xy rows 0:87 of w[0])
    h = layer(h, 1, True)             # 60 -> 40
    h = layer(h, 2, True)             # 40 -> 20
    enc = layer(h, 3, False)          # 20 -> mu, packed into lanes 87:90; exact 0 elsewhere

    # ---- decoder: l_x_yz(cat(y, mu)) ----
    # xy + enc == [x | y | mu | 0] slab; merged w[4] has zero rows for x/pad
    # lanes so only y (rows 78:87) and mu (rows 87:90) contribute.
    d = layer(xy + enc, 4, True)      # 12 -> 22  (single merged matmul)
    d = layer(d, 5, True)             # 22 -> 32
    d = layer(d, 6, True)             # 32 -> 42
    d = layer(d, 7, True)             # 42 -> 52
    d = layer(d, 8, True)             # 52 -> 68
    out_ref[...] = layer(d, 9, False)  # 68 -> 78 (lanes 78:128 exactly zero)


# ----------------------------- parameters ------------------------------------


def init_linear(key, in_f, out_f):
    """PyTorch-default-style uniform init; weight stored as (in, out)."""
    kw, kb = jax.random.split(key)
    bound = 1.0 / jnp.sqrt(jnp.float32(in_f))
    w = jax.random.uniform(kw, (in_f, out_f), jnp.float32, -bound, bound)
    b = jax.random.uniform(kb, (1, out_f), jnp.float32, -bound, bound)
    return w, b


def make_params(key):
    """Raw (unpadded) per-layer (weight, bias) pairs, PyTorch layer order."""
    keys = jax.random.split(key, 10)
    dims = [(87, 60), (60, 40), (40, 20), (20, 6),                    # l_z_xy
            (12, 22), (22, 32), (32, 42), (42, 52), (52, 68), (68, 78)]  # l_x_yz
    return [init_linear(k, i, o) for k, (i, o) in zip(keys, dims)]


def pack_params(raw):
    """Pack raw params into a (10,128,128) bf16 weight slab + (10,128) f32 biases.

    Invariant: every padded weight has zero rows beyond its true fan-in lanes and
    zero cols beyond its true fan-out lanes, so padded lanes (which carry
    softplus(0)=ln2 after activations) never contaminate real outputs.
    """
    ((ew1, eb1), (ew2, eb2), (ew3, eb3), (ew4, eb4),
     (dw1, db1), (dw2, db2), (dw3, db3), (dw4, db4), (dw5, db5), (dw6, db6)) = raw

    def pad_w(w, row_off=0, col_off=0):
        slab = jnp.zeros((LANES, LANES), jnp.float32)
        return slab.at[row_off:row_off + w.shape[0],
                       col_off:col_off + w.shape[1]].set(w)

    def pad_b(b, col_off=0):
        return jnp.zeros((LANES,), jnp.float32).at[col_off:col_off + b.shape[1]].set(b[0])

    w_slab = jnp.stack([
        pad_w(ew1),                                  # 0: enc L1, xy rows 0:87
        pad_w(ew2),                                  # 1: enc L2
        pad_w(ew3),                                  # 2: enc L3
        pad_w(ew4[:, :MU_DIM], col_off=MU_OFF),      # 3: enc L4 mu-only, out lanes 87:90
        pad_w(dw1, row_off=X_DIM),                   # 4: dec L1 merged: y rows 78:87, mu rows 87:90
        pad_w(dw2),                                  # 5
        pad_w(dw3),                                  # 6
        pad_w(dw4),                                  # 7
        pad_w(dw5),                                  # 8
        pad_w(dw6),                                  # 9
    ]).astype(jnp.bfloat16)                          # bf16 MXU operands

    b_slab = jnp.stack([
        pad_b(eb1), pad_b(eb2), pad_b(eb3),
        pad_b(eb4[:, :MU_DIM], col_off=MU_OFF),
        pad_b(db1), pad_b(db2), pad_b(db3), pad_b(db4), pad_b(db5), pad_b(db6),
    ])                                               # f32 bias adds
    return w_slab, b_slab


# ------------------------------- wrapper --------------------------------------


def _choose_tiling(B):
    """Pick (batch_tile, padded_B): tile ≤ 1024 rows, even #tiles when B allows
    (balanced across v7x's 2 TensorCores), multiples of 8 sublanes."""
    Bp = _round_up(max(B, 1), 8)
    if Bp <= 8:
        return Bp, Bp
    nt = max(2, pl.cdiv(Bp, MAX_TILE))
    if nt % 2:
        nt += 1
    bt = _round_up(pl.cdiv(Bp, nt), 8)
    return bt, bt * nt


@jax.jit
def cvae2_forward_slab(x, y, packed_params):
    """x: (B, 78), y: (B, 9). Returns lane-dense (B_padded, 128) f32 slab:
    reconstruction in lanes 0:78, exact zeros elsewhere (no trim copy)."""
    w_slab, b_slab = packed_params
    B = x.shape[0]
    bt, Bp = _choose_tiling(B)
    num_tiles = Bp // bt

    xf = x.astype(jnp.float32)
    yf = y.astype(jnp.float32)
    if Bp != B:
        xf = jnp.pad(xf, ((0, Bp - B), (0, 0)))
        yf = jnp.pad(yf, ((0, Bp - B), (0, 0)))

    cost = pl.CostEstimate(
        flops=2 * N_W * LANES * LANES * Bp,
        transcendentals=2 * 8 * LANES * Bp,              # exp + log1p per softplus
        bytes_accessed=(Bp * (X_DIM + Y_DIM) * 4 + Bp * LANES * 4
                        + N_W * LANES * LANES * 2 + N_B * LANES * 4),
    )

    return pl.pallas_call(
        cvae2_kernel,
        out_shape=jax.ShapeDtypeStruct((Bp, LANES), jnp.float32),
        grid=(num_tiles,),
        in_specs=[
            pl.BlockSpec((bt, X_DIM), lambda i: (i, 0)),               # x tile
            pl.BlockSpec((bt, Y_DIM), lambda i: (i, 0)),               # y tile
            pl.BlockSpec((N_W, LANES, LANES), lambda i: (0, 0, 0)),    # weights (resident)
            pl.BlockSpec((N_B, LANES), lambda i: (0, 0)),              # biases  (resident)
        ],
        out_specs=pl.BlockSpec((bt, LANES), lambda i: (i, 0)),
        scratch_shapes=[pltpu.VMEM((bt, LANES), jnp.float32)],
        compiler_params=pltpu.CompilerParams(
            dimension_semantics=("parallel",)),
        cost_estimate=cost,
    )(xf, yf, w_slab, b_slab)


def cvae2_forward(x, y, packed_params):
    """Convenience wrapper returning the (B, 78) reconstruction (extra trim copy)."""
    B = x.shape[0]
    return cvae2_forward_slab(x, y, packed_params)[:B, :X_DIM]


# ------------------------------ references ------------------------------------


def cvae2_forward_ref(x, y, raw, matmul_dtype=jnp.float32):
    """Pure-JAX reference matching the PyTorch forward.  With
    matmul_dtype=bf16 it reproduces the kernel's matmul precision exactly
    (bf16 operands, f32 accumulation, f32 bias/softplus)."""
    ((ew1, eb1), (ew2, eb2), (ew3, eb3), (ew4, eb4),
     (dw1, db1), (dw2, db2), (dw3, db3), (dw4, db4), (dw5, db5), (dw6, db6)) = raw

    def dot(a, w):
        return jnp.dot(a.astype(matmul_dtype), w.astype(matmul_dtype),
                       preferred_element_type=jnp.float32)

    xy = jnp.concatenate([x, y], axis=1)
    h = jax.nn.softplus(dot(xy, ew1) + eb1)
    h = jax.nn.softplus(dot(h, ew2) + eb2)
    h = jax.nn.softplus(dot(h, ew3) + eb3)
    enc = dot(h, ew4) + eb4
    mu = enc[:, :MU_DIM]
    yz = jnp.concatenate([y, mu], axis=1)
    d = jax.nn.softplus(dot(yz, dw1) + db1)
    d = jax.nn.softplus(dot(d, dw2) + db2)
    d = jax.nn.softplus(dot(d, dw3) + db3)
    d = jax.nn.softplus(dot(d, dw4) + db4)
    d = jax.nn.softplus(dot(d, dw5) + db5)
    return dot(d, dw6) + db6


# -------------------------------- test ----------------------------------------


if __name__ == "__main__":
    key = jax.random.PRNGKey(0)
    kx, ky, kp = jax.random.split(key, 3)

    raw = make_params(kp)
    packed = pack_params(raw)

    def check(B, kxx, kyy):
        x = jax.random.normal(kxx, (B, X_DIM), jnp.float32)
        y = jax.nn.one_hot(jax.random.randint(kyy, (B,), 0, Y_DIM), Y_DIM,
                           dtype=jnp.float32)
        out = jax.block_until_ready(cvae2_forward(x, y, packed))
        assert out.shape == (B, X_DIM)
        # Precision-matched reference (bf16 MXU operands) — tight check.
        ref_bf16 = cvae2_forward_ref(x, y, raw, matmul_dtype=jnp.bfloat16)
        assert jnp.allclose(out, ref_bf16, atol=1e-3, rtol=1e-3), \
            f"mismatch vs bf16-matched reference (B={B})"
        # Full-f32 reference — loose sanity check (bf16 rounding only).
        ref_f32 = cvae2_forward_ref(x, y, raw, matmul_dtype=jnp.float32)
        assert jnp.allclose(out, ref_f32, atol=1e-1, rtol=1e-1), \
            f"mismatch vs f32 reference (B={B})"

    # Small batch (single grid step).
    check(8, kx, ky)
    # Larger batch exercises the batch grid, row padding, and the even
    # 2-tile split (B=300 -> 2 tiles of 152 rows).
    check(300, kx, ky)

    print("KERNEL_OK")
</pallas_src>

<mosaic_0001>
module attributes {stable_mosaic.version = 11 : i64} {
  func.func @cvae2_kernel(%arg0: i32, %arg1: memref<8x78xf32, #tpu.memory_space<vmem>>, %arg2: memref<8x9xf32, #tpu.memory_space<vmem>>, %arg3: memref<10x128x128xbf16, #tpu.memory_space<vmem>>, %arg4: memref<10x128xf32, #tpu.memory_space<vmem>>, %arg5: memref<8x128xf32, #tpu.memory_space<vmem>>, %arg6: memref<8x128xf32, #tpu.memory_space<vmem>>) attributes {dimension_semantics = [#tpu.dimension_semantics<parallel>], iteration_bounds = array<i64: 1>, scalar_prefetch = 0 : i64, scratch_operands = 1 : i64, tpu.core_type = #tpu.core_type<tc>, window_params = [{transform_indices = @transform_0, window_bounds = array<i64: 8, 78>}, {transform_indices = @transform_1, window_bounds = array<i64: 8, 9>}, {pipeline_mode = #tpu.pipeline_mode<synchronous>, transform_indices = @transform_2, window_bounds = array<i64: 10, 128, 128>}, {pipeline_mode = #tpu.pipeline_mode<synchronous>, transform_indices = @transform_3, window_bounds = array<i64: 10, 128>}, {transform_indices = @transform_4, window_bounds = array<i64: 8, 128>}]} {
    %cst = arith.constant 0.000000e+00 : f32
    %0 = vector.broadcast %cst : f32 to vector<8x128xf32>
    %c0 = arith.constant 0 : index
    %c0_0 = arith.constant 0 : index
    %1 = vector.load %arg6[%c0, %c0_0] : memref<8x128xf32, #tpu.memory_space<vmem>>, vector<8x128xf32>
    tpu.vector_store %arg6[%c0, %c0_0], %0 {strides = array<i32>} : memref<8x128xf32, #tpu.memory_space<vmem>>, vector<8x128xf32>,
    %c0_1 = arith.constant 0 : index
    %c0_2 = arith.constant 0 : index
    %2 = vector.load %arg1[%c0_1, %c0_2] : memref<8x78xf32, #tpu.memory_space<vmem>>, vector<8x78xf32>
    %c0_3 = arith.constant 0 : index
    %c0_4 = arith.constant 0 : index
    %3 = vector.load %arg6[%c0_3, %c0_4] : memref<8x128xf32, #tpu.memory_space<vmem>>, vector<8x78xf32>
    tpu.vector_store %arg6[%c0_3, %c0_4], %2 {strides = array<i32>} : memref<8x128xf32, #tpu.memory_space<vmem>>, vector<8x78xf32>,
    %c0_5 = arith.constant 0 : index
    %c0_6 = arith.constant 0 : index
    %4 = vector.load %arg2[%c0_5, %c0_6] : memref<8x9xf32, #tpu.memory_space<vmem>>, vector<8x9xf32>
    %c0_7 = arith.constant 0 : index
    %c78 = arith.constant 78 : index
    %5 = vector.load %arg6[%c0_7, %c78] : memref<8x128xf32, #tpu.memory_space<vmem>>, vector<8x9xf32>
    tpu.vector_store %arg6[%c0_7, %c78], %4 {strides = array<i32>} : memref<8x128xf32, #tpu.memory_space<vmem>>, vector<8x9xf32>,
    %c0_8 = arith.constant 0 : index
    %c0_9 = arith.constant 0 : index
    %6 = vector.load %arg6[%c0_8, %c0_9] : memref<8x128xf32, #tpu.memory_space<vmem>>, vector<8x128xf32>
    %7 = arith.truncf %6 : vector<8x128xf32> to vector<8x128xbf16>
    %c0_10 = arith.constant 0 : index
    %c0_11 = arith.constant 0 : index
    %c0_12 = arith.constant 0 : index
    %8 = vector.load %arg3[%c0_10, %c0_11, %c0_12] : memref<10x128x128xbf16, #tpu.memory_space<vmem>>, vector<1x128x128xbf16>
    %9 = vector.shape_cast %8 : vector<1x128x128xbf16> to vector<128x128xbf16>
    %cst_13 = arith.constant dense<0.000000e+00> : vector<8x128xf32>
    %10 = tpu.matmul %7, %9, %cst_13 {dimension_numbers = #tpu.dot_dimension_numbers<[1], [0], [0], [1], [0, 0, 1, 1], [], []>} : vector<8x128xbf16>, vector<128x128xbf16>, vector<8x128xf32> -> vector<8x128xf32>
    %c0_14 = arith.constant 0 : index
    %c0_15 = arith.constant 0 : index
    %11 = vector.load %arg4[%c0_14, %c0_15] : memref<10x128xf32, #tpu.memory_space<vmem>>, vector<1x128xf32>
    %12 = vector.broadcast %11 : vector<1x128xf32> to vector<8x128xf32>
    %13 = arith.addf %10, %12 : vector<8x128xf32>
    %cst_16 = arith.constant 0.000000e+00 : f32
    %14 = vector.broadcast %cst_16 : f32 to vector<8x128xf32>
    %15 = arith.maximumf %13, %14 : vector<8x128xf32>
    %16 = math.absf %13 : vector<8x128xf32>
    %cst_17 = arith.constant 0.000000e+00 : f32
    %17 = vector.broadcast %cst_17 : f32 to vector<8x128xf32>
    %18 = arith.subf %17, %16 : vector<8x128xf32>
    %19 = math.exp %18 : vector<8x128xf32>
    %20 = math.log1p %19 : vector<8x128xf32>
    %21 = arith.addf %15, %20 : vector<8x128xf32>
    %22 = arith.truncf %21 : vector<8x128xf32> to vector<8x128xbf16>
    %c1 = arith.constant 1 : index
    %c0_18 = arith.constant 0 : index
    %c0_19 = arith.constant 0 : index
    %23 = vector.load %arg3[%c1, %c0_18, %c0_19] : memref<10x128x128xbf16, #tpu.memory_space<vmem>>, vector<1x128x128xbf16>
    %24 = vector.shape_cast %23 : vector<1x128x128xbf16> to vector<128x128xbf16>
    %cst_20 = arith.constant dense<0.000000e+00> : vector<8x128xf32>
    %25 = tpu.matmul %22, %24, %cst_20 {dimension_numbers = #tpu.dot_dimension_numbers<[1], [0], [0], [1], [0, 0, 1, 1], [], []>} : vector<8x128xbf16>, vector<128x128xbf16>, vector<8x128xf32> -> vector<8x128xf32>
    %c1_21 = arith.constant 1 : index
    %c0_22 = arith.constant 0 : index
    %26 = vector.load %arg4[%c1_21, %c0_22] : memref<10x128xf32, #tpu.memory_space<vmem>>, vector<1x128xf32>
    %27 = vector.broadcast %26 : vector<1x128xf32> to vector<8x128xf32>
    %28 = arith.addf %25, %27 : vector<8x128xf32>
    %cst_23 = arith.constant 0.000000e+00 : f32
    %29 = vector.broadcast %cst_23 : f32 to vector<8x128xf32>
    %30 = arith.maximumf %28, %29 : vector<8x128xf32>
    %31 = math.absf %28 : vector<8x128xf32>
    %cst_24 = arith.constant 0.000000e+00 : f32
    %32 = vector.broadcast %cst_24 : f32 to vector<8x128xf32>
    %33 = arith.subf %32, %31 : vector<8x128xf32>
    %34 = math.exp %33 : vector<8x128xf32>
    %35 = math.log1p %34 : vector<8x128xf32>
    %36 = arith.addf %30, %35 : vector<8x128xf32>
    %37 = arith.truncf %36 : vector<8x128xf32> to vector<8x128xbf16>
    %c2 = arith.constant 2 : index
    %c0_25 = arith.constant 0 : index
    %c0_26 = arith.constant 0 : index
    %38 = vector.load %arg3[%c2, %c0_25, %c0_26] : memref<10x128x128xbf16, #tpu.memory_space<vmem>>, vector<1x128x128xbf16>
    %39 = vector.shape_cast %38 : vector<1x128x128xbf16> to vector<128x128xbf16>
    %cst_27 = arith.constant dense<0.000000e+00> : vector<8x128xf32>
    %40 = tpu.matmul %37, %39, %cst_27 {dimension_numbers = #tpu.dot_dimension_numbers<[1], [0], [0], [1], [0, 0, 1, 1], [], []>} : vector<8x128xbf16>, vector<128x128xbf16>, vector<8x128xf32> -> vector<8x128xf32>
    %c2_28 = arith.constant 2 : index
    %c0_29 = arith.constant 0 : index
    %41 = vector.load %arg4[%c2_28, %c0_29] : memref<10x128xf32, #tpu.memory_space<vmem>>, vector<1x128xf32>
    %42 = vector.broadcast %41 : vector<1x128xf32> to vector<8x128xf32>
    %43 = arith.addf %40, %42 : vector<8x128xf32>
    %cst_30 = arith.constant 0.000000e+00 : f32
    %44 = vector.broadcast %cst_30 : f32 to vector<8x128xf32>
    %45 = arith.maximumf %43, %44 : vector<8x128xf32>
    %46 = math.absf %43 : vector<8x128xf32>
    %cst_31 = arith.constant 0.000000e+00 : f32
    %47 = vector.broadcast %cst_31 : f32 to vector<8x128xf32>
    %48 = arith.subf %47, %46 : vector<8x128xf32>
    %49 = math.exp %48 : vector<8x128xf32>
    %50 = math.log1p %49 : vector<8x128xf32>
    %51 = arith.addf %45, %50 : vector<8x128xf32>
    %52 = arith.truncf %51 : vector<8x128xf32> to vector<8x128xbf16>
    %c3 = arith.constant 3 : index
    %c0_32 = arith.constant 0 : index
    %c0_33 = arith.constant 0 : index
    %53 = vector.load %arg3[%c3, %c0_32, %c0_33] : memref<10x128x128xbf16, #tpu.memory_space<vmem>>, vector<1x128x128xbf16>
    %54 = vector.shape_cast %53 : vector<1x128x128xbf16> to vector<128x128xbf16>
    %cst_34 = arith.constant dense<0.000000e+00> : vector<8x128xf32>
    %55 = tpu.matmul %52, %54, %cst_34 {dimension_numbers = #tpu.dot_dimension_numbers<[1], [0], [0], [1], [0, 0, 1, 1], [], []>} : vector<8x128xbf16>, vector<128x128xbf16>, vector<8x128xf32> -> vector<8x128xf32>
    %c3_35 = arith.constant 3 : index
    %c0_36 = arith.constant 0 : index
    %56 = vector.load %arg4[%c3_35, %c0_36] : memref<10x128xf32, #tpu.memory_space<vmem>>, vector<1x128xf32>
    %57 = vector.broadcast %56 : vector<1x128xf32> to vector<8x128xf32>
    %58 = arith.addf %55, %57 : vector<8x128xf32>
    %59 = arith.addf %6, %58 : vector<8x128xf32>
    %60 = arith.truncf %59 : vector<8x128xf32> to vector<8x128xbf16>
    %c4 = arith.constant 4 : index
    %c0_37 = arith.constant 0 : index
    %c0_38 = arith.constant 0 : index
    %61 = vector.load %arg3[%c4, %c0_37, %c0_38] : memref<10x128x128xbf16, #tpu.memory_space<vmem>>, vector<1x128x128xbf16>
    %62 = vector.shape_cast %61 : vector<1x128x128xbf16> to vector<128x128xbf16>
    %cst_39 = arith.constant dense<0.000000e+00> : vector<8x128xf32>
    %63 = tpu.matmul %60, %62, %cst_39 {dimension_numbers = #tpu.dot_dimension_numbers<[1], [0], [0], [1], [0, 0, 1, 1], [], []>} : vector<8x128xbf16>, vector<128x128xbf16>, vector<8x128xf32> -> vector<8x128xf32>
    %c4_40 = arith.constant 4 : index
    %c0_41 = arith.constant 0 : index
    %64 = vector.load %arg4[%c4_40, %c0_41] : memref<10x128xf32, #tpu.memory_space<vmem>>, vector<1x128xf32>
    %65 = vector.broadcast %64 : vector<1x128xf32> to vector<8x128xf32>
    %66 = arith.addf %63, %65 : vector<8x128xf32>
    %cst_42 = arith.constant 0.000000e+00 : f32
    %67 = vector.broadcast %cst_42 : f32 to vector<8x128xf32>
    %68 = arith.maximumf %66, %67 : vector<8x128xf32>
    %69 = math.absf %66 : vector<8x128xf32>
    %cst_43 = arith.constant 0.000000e+00 : f32
    %70 = vector.broadcast %cst_43 : f32 to vector<8x128xf32>
    %71 = arith.subf %70, %69 : vector<8x128xf32>
    %72 = math.exp %71 : vector<8x128xf32>
    %73 = math.log1p %72 : vector<8x128xf32>
    %74 = arith.addf %68, %73 : vector<8x128xf32>
    %75 = arith.truncf %74 : vector<8x128xf32> to vector<8x128xbf16>
    %c5 = arith.constant 5 : index
    %c0_44 = arith.constant 0 : index
    %c0_45 = arith.constant 0 : index
    %76 = vector.load %arg3[%c5, %c0_44, %c0_45] : memref<10x128x128xbf16, #tpu.memory_space<vmem>>, vector<1x128x128xbf16>
    %77 = vector.shape_cast %76 : vector<1x128x128xbf16> to vector<128x128xbf16>
    %cst_46 = arith.constant dense<0.000000e+00> : vector<8x128xf32>
    %78 = tpu.matmul %75, %77, %cst_46 {dimension_numbers = #tpu.dot_dimension_numbers<[1], [0], [0], [1], [0, 0, 1, 1], [], []>} : vector<8x128xbf16>, vector<128x128xbf16>, vector<8x128xf32> -> vector<8x128xf32>
    %c5_47 = arith.constant 5 : index
    %c0_48 = arith.constant 0 : index
    %79 = vector.load %arg4[%c5_47, %c0_48] : memref<10x128xf32, #tpu.memory_space<vmem>>, vector<1x128xf32>
    %80 = vector.broadcast %79 : vector<1x128xf32> to vector<8x128xf32>
    %81 = arith.addf %78, %80 : vector<8x128xf32>
    %cst_49 = arith.constant 0.000000e+00 : f32
    %82 = vector.broadcast %cst_49 : f32 to vector<8x128xf32>
    %83 = arith.maximumf %81, %82 : vector<8x128xf32>
    %84 = math.absf %81 : vector<8x128xf32>
    %cst_50 = arith.constant 0.000000e+00 : f32
    %85 = vector.broadcast %cst_50 : f32 to vector<8x128xf32>
    %86 = arith.subf %85, %84 : vector<8x128xf32>
    %87 = math.exp %86 : vector<8x128xf32>
    %88 = math.log1p %87 : vector<8x128xf32>
    %89 = arith.addf %83, %88 : vector<8x128xf32>
    %90 = arith.truncf %89 : vector<8x128xf32> to vector<8x128xbf16>
    %c6 = arith.constant 6 : index
    %c0_51 = arith.constant 0 : index
    %c0_52 = arith.constant 0 : index
    %91 = vector.load %arg3[%c6, %c0_51, %c0_52] : memref<10x128x128xbf16, #tpu.memory_space<vmem>>, vector<1x128x128xbf16>
    %92 = vector.shape_cast %91 : vector<1x128x128xbf16> to vector<128x128xbf16>
    %cst_53 = arith.constant dense<0.000000e+00> : vector<8x128xf32>
    %93 = tpu.matmul %90, %92, %cst_53 {dimension_numbers = #tpu.dot_dimension_numbers<[1], [0], [0], [1], [0, 0, 1, 1], [], []>} : vector<8x128xbf16>, vector<128x128xbf16>, vector<8x128xf32> -> vector<8x128xf32>
    %c6_54 = arith.constant 6 : index
    %c0_55 = arith.constant 0 : index
    %94 = vector.load %arg4[%c6_54, %c0_55] : memref<10x128xf32, #tpu.memory_space<vmem>>, vector<1x128xf32>
    %95 = vector.broadcast %94 : vector<1x128xf32> to vector<8x128xf32>
    %96 = arith.addf %93, %95 : vector<8x128xf32>
    %cst_56 = arith.constant 0.000000e+00 : f32
    %97 = vector.broadcast %cst_56 : f32 to vector<8x128xf32>
    %98 = arith.maximumf %96, %97 : vector<8x128xf32>
    %99 = math.absf %96 : vector<8x128xf32>
    %cst_57 = arith.constant 0.000000e+00 : f32
    %100 = vector.broadcast %cst_57 : f32 to vector<8x128xf32>
    %101 = arith.subf %100, %99 : vector<8x128xf32>
    %102 = math.exp %101 : vector<8x128xf32>
    %103 = math.log1p %102 : vector<8x128xf32>
    %104 = arith.addf %98, %103 : vector<8x128xf32>
    %105 = arith.truncf %104 : vector<8x128xf32> to vector<8x128xbf16>
    %c7 = arith.constant 7 : index
    %c0_58 = arith.constant 0 : index
    %c0_59 = arith.constant 0 : index
    %106 = vector.load %arg3[%c7, %c0_58, %c0_59] : memref<10x128x128xbf16, #tpu.memory_space<vmem>>, vector<1x128x128xbf16>
    %107 = vector.shape_cast %106 : vector<1x128x128xbf16> to vector<128x128xbf16>
    %cst_60 = arith.constant dense<0.000000e+00> : vector<8x128xf32>
    %108 = tpu.matmul %105, %107, %cst_60 {dimension_numbers = #tpu.dot_dimension_numbers<[1], [0], [0], [1], [0, 0, 1, 1], [], []>} : vector<8x128xbf16>, vector<128x128xbf16>, vector<8x128xf32> -> vector<8x128xf32>
    %c7_61 = arith.constant 7 : index
    %c0_62 = arith.constant 0 : index
    %109 = vector.load %arg4[%c7_61, %c0_62] : memref<10x128xf32, #tpu.memory_space<vmem>>, vector<1x128xf32>
    %110 = vector.broadcast %109 : vector<1x128xf32> to vector<8x128xf32>
    %111 = arith.addf %108, %110 : vector<8x128xf32>
    %cst_63 = arith.constant 0.000000e+00 : f32
    %112 = vector.broadcast %cst_63 : f32 to vector<8x128xf32>
    %113 = arith.maximumf %111, %112 : vector<8x128xf32>
    %114 = math.absf %111 : vector<8x128xf32>
    %cst_64 = arith.constant 0.000000e+00 : f32
    %115 = vector.broadcast %cst_64 : f32 to vector<8x128xf32>
    %116 = arith.subf %115, %114 : vector<8x128xf32>
    %117 = math.exp %116 : vector<8x128xf32>
    %118 = math.log1p %117 : vector<8x128xf32>
    %119 = arith.addf %113, %118 : vector<8x128xf32>
    %120 = arith.truncf %119 : vector<8x128xf32> to vector<8x128xbf16>
    %c8 = arith.constant 8 : index
    %c0_65 = arith.constant 0 : index
    %c0_66 = arith.constant 0 : index
    %121 = vector.load %arg3[%c8, %c0_65, %c0_66] : memref<10x128x128xbf16, #tpu.memory_space<vmem>>, vector<1x128x128xbf16>
    %122 = vector.shape_cast %121 : vector<1x128x128xbf16> to vector<128x128xbf16>
    %cst_67 = arith.constant dense<0.000000e+00> : vector<8x128xf32>
    %123 = tpu.matmul %120, %122, %cst_67 {dimension_numbers = #tpu.dot_dimension_numbers<[1], [0], [0], [1], [0, 0, 1, 1], [], []>} : vector<8x128xbf16>, vector<128x128xbf16>, vector<8x128xf32> -> vector<8x128xf32>
    %c8_68 = arith.constant 8 : index
    %c0_69 = arith.constant 0 : index
    %124 = vector.load %arg4[%c8_68, %c0_69] : memref<10x128xf32, #tpu.memory_space<vmem>>, vector<1x128xf32>
    %125 = vector.broadcast %124 : vector<1x128xf32> to vector<8x128xf32>
    %126 = arith.addf %123, %125 : vector<8x128xf32>
    %cst_70 = arith.constant 0.000000e+00 : f32
    %127 = vector.broadcast %cst_70 : f32 to vector<8x128xf32>
    %128 = arith.maximumf %126, %127 : vector<8x128xf32>
    %129 = math.absf %126 : vector<8x128xf32>
    %cst_71 = arith.constant 0.000000e+00 : f32
    %130 = vector.broadcast %cst_71 : f32 to vector<8x128xf32>
    %131 = arith.subf %130, %129 : vector<8x128xf32>
    %132 = math.exp %131 : vector<8x128xf32>
    %133 = math.log1p %132 : vector<8x128xf32>
    %134 = arith.addf %128, %133 : vector<8x128xf32>
    %135 = arith.truncf %134 : vector<8x128xf32> to vector<8x128xbf16>
    %c9 = arith.constant 9 : index
    %c0_72 = arith.constant 0 : index
    %c0_73 = arith.constant 0 : index
    %136 = vector.load %arg3[%c9, %c0_72, %c0_73] : memref<10x128x128xbf16, #tpu.memory_space<vmem>>, vector<1x128x128xbf16>
    %137 = vector.shape_cast %136 : vector<1x128x128xbf16> to vector<128x128xbf16>
    %cst_74 = arith.constant dense<0.000000e+00> : vector<8x128xf32>
    %138 = tpu.matmul %135, %137, %cst_74 {dimension_numbers = #tpu.dot_dimension_numbers<[1], [0], [0], [1], [0, 0, 1, 1], [], []>} : vector<8x128xbf16>, vector<128x128xbf16>, vector<8x128xf32> -> vector<8x128xf32>
    %c9_75 = arith.constant 9 : index
    %c0_76 = arith.constant 0 : index
    %139 = vector.load %arg4[%c9_75, %c0_76] : memref<10x128xf32, #tpu.memory_space<vmem>>, vector<1x128xf32>
    %140 = vector.broadcast %139 : vector<1x128xf32> to vector<8x128xf32>
    %141 = arith.addf %138, %140 : vector<8x128xf32>
    %c0_77 = arith.constant 0 : index
    %c0_78 = arith.constant 0 : index
    %142 = vector.load %arg5[%c0_77, %c0_78] : memref<8x128xf32, #tpu.memory_space<vmem>>, vector<8x128xf32>
    tpu.vector_store %arg5[%c0_77, %c0_78], %141 {strides = array<i32>} : memref<8x128xf32, #tpu.memory_space<vmem>>, vector<8x128xf32>,
    return
  }
  func.func @transform_0(%arg0: i32) -> (i32, i32) {
    %c0_i32 = arith.constant 0 : i32
    %c0_i32_0 = arith.constant 0 : i32
    return %arg0, %c0_i32 : i32, i32
  }
  func.func @transform_1(%arg0: i32) -> (i32, i32) {
    %c0_i32 = arith.constant 0 : i32
    %c0_i32_0 = arith.constant 0 : i32
    return %arg0, %c0_i32 : i32, i32
  }
  func.func @transform_2(%arg0: i32) -> (i32, i32, i32) {
    %c0_i32 = arith.constant 0 : i32
    %c0_i32_0 = arith.constant 0 : i32
    %c0_i32_1 = arith.constant 0 : i32
    %c0_i32_2 = arith.constant 0 : i32
    return %c0_i32, %c0_i32_0, %c0_i32_1 : i32, i32, i32
  }
  func.func @transform_3(%arg0: i32) -> (i32, i32) {
    %c0_i32 = arith.constant 0 : i32
    %c0_i32_0 = arith.constant 0 : i32
    %c0_i32_1 = arith.constant 0 : i32
    return %c0_i32, %c0_i32_0 : i32, i32
  }
  func.func @transform_4(%arg0: i32) -> (i32, i32) {
    %c0_i32 = arith.constant 0 : i32
    %c0_i32_0 = arith.constant 0 : i32
    return %arg0, %c0_i32 : i32, i32
  }
}

</mosaic_0001>

<bundles_post_ra>
// kernel: cvae2_forward_slab.1
= control target key start
LH: loop header
LB: loop body
LE: loop exit
PB: predicated region body
PF: predicated region fallthrough
CT: control target
= control target key end

     0   :  { %9 = vsyncpa [#allocation4], 0  ;;  %s2100_s0 = inlined_call_operand.hbm [shape: f32[8,78], index: 0, kind: input, shape index: {}]   ;;  %s2101_s1 = inlined_call_operand.hbm [shape: f32[8,9], index: 1, kind: input, shape index: {}]   ;;  %s2102_s2 = inlined_call_operand.hbm [shape: bf16[10,128,128], index: 2, kind: input, shape index: {}]   ;;  %s2103_s3 = inlined_call_operand.hbm [shape: f32[10,128], index: 3, kind: input, shape index: {}]   ;;  %s2104_s4 = inlined_call_operand.hbm [shape: f32[8,128], index: 4, kind: output, shape index: {}]  }
   0x1   :  { %10 = vsyncpa [#allocation7], 0 }
   0x2   :  { %11 = vsyncpa [#allocation10], 0 }
   0x3   :  { %12 = vsyncpa [#allocation5], 0  ;;  %s1942_s15 = smov [#allocation6]   ;;  %s1943_s17 = smov [#allocation3]  }
   0x4   :  { %s29_s16 = sshll.u32 %s1942_s15, 4  ;;  %s19_s18 = sshll.u32 %s1943_s17, 4  ;;  %s30_s16 = int_to_ptr.vmem [resolvable:$true] %s29_s16  ;;  %s20_s18 = int_to_ptr.vmem [resolvable:$true] %s19_s18 }
   0x5   :  { %s1842_s19 = scalar_lea.vmem %s30_s16, 128  ;;  %p1847_p1 = scmp.lt.s32.totalorder %s30_s16, %s30_s16 }
   0x6   :  { %p1843_p0 = scmp.ne.s32.totalorder %s30_s16, %s1842_s19  ;;  %p1848_p2 = scmp.lt.s32.totalorder %s1842_s19, %s1842_s19 }
   0x8   :  { %p1849_p3 = por %p1848_p2, %p1847_p1 }
   0xa   :  { %p1850_p4 = pnand %p1849_p3, %p1843_p0 }
   0xc   :  { %1853 = shalt.err (!%p1850_p4)
}
   0xd   :  { %32 = dma.hbm_to_vmem [thread:$0]  %s2101_s1, 128, %s30_s16, [#allocation7]  }
   0xe   :  { %s1862_s22 = scalar_lea.vmem %s20_s18, 128  ;;  %p1867_p6 = scmp.lt.s32.totalorder %s20_s18, %s20_s18 }
   0xf   :  { %p1863_p5 = scmp.ne.s32.totalorder %s20_s18, %s1862_s22  ;;  %p1868_p7 = scmp.lt.s32.totalorder %s1862_s22, %s1862_s22 }
  0x11   :  { %p1869_p8 = por %p1868_p7, %p1867_p6 }
  0x13   :  { %p1870_p9 = pnand %p1869_p8, %p1863_p5 }
  0x15   :  { %1873 = shalt.err (!%p1870_p9)
}
  0x16   :  { %22 = dma.hbm_to_vmem [thread:$0]  %s2100_s0, 128, %s20_s18, [#allocation4]  }
  0x17   :  { %s1944_s25 = smov [#allocation8]  }
  0x18   :  { %s38_s26 = sshll.u32 %s1944_s25, 4  ;;  %s39_s26 = int_to_ptr.vmem [resolvable:$true] %s38_s26 }
  0x19   :  { %s1882_s27 = scalar_lea.vmem %s39_s26, 10240  ;;  %p1887_p11 = scmp.lt.s32.totalorder %s39_s26, %s39_s26 }
  0x1a   :  { %p1883_p10 = scmp.ne.s32.totalorder %s39_s26, %s1882_s27  ;;  %p1888_p12 = scmp.lt.s32.totalorder %s1882_s27, %s1882_s27 }
  0x1c   :  { %p1889_p13 = por %p1888_p12, %p1887_p11 }
  0x1e   :  { %p1890_p0 = pnand %p1889_p13, %p1883_p10 }
  0x20   :  { %1893 = shalt.err (!%p1890_p0)
}
  0x21   :  { %s1945_s1 = smov 64   ;;  %s1946_s28 = smov 4  }
  0x22   :  { %44 = dma.hbm_to_vmem [thread:$0]  %s2102_s2, 10240, %s39_s26, [#allocation7], %s1945_s1, %s1945_s1, %s1946_s28  }
  0x23   :  { %s1947_s5 = smov [#allocation9]  }
  0x24   :  { %s50_s6 = sshll.u32 %s1947_s5, 4  ;;  %s51_s6 = int_to_ptr.vmem [resolvable:$true] %s50_s6 }
  0x25   :  { %s1902_s0 = scalar_lea.vmem %s51_s6, 256  ;;  %p1907_p2 = scmp.lt.s32.totalorder %s51_s6, %s51_s6 }
  0x26   :  { %p1903_p1 = scmp.ne.s32.totalorder %s51_s6, %s1902_s0  ;;  %p1908_p3 = scmp.lt.s32.totalorder %s1902_s0, %s1902_s0 }
  0x28   :  { %p1909_p4 = por %p1908_p3, %p1907_p2 }
  0x2a   :  { %p1910_p5 = pnand %p1909_p4, %p1903_p1 }
  0x2c   :  { %1913 = shalt.err (!%p1910_p5)
}
  0x2d   :  { %s1948_s7 = smov 128   ;;  %s1949_s8 = smov 8  }
  0x2e   :  { %56 = dma.hbm_to_vmem [thread:$0]  %s2103_s3, 256, %s51_s6, [#allocation10], %s1948_s7, %s1948_s7, %s1949_s8  }
  0x2f   :  { %1934 = dma.done.wait [#allocation4], 128  }
  0x30   :  { %1935 = vsyncadd [#allocation4], 4294967168 }
  0x31   :  { %1936 = dma.done.wait [#allocation7], 10368  }
  0x32   :  { %1937 = vsyncadd [#allocation7], 4294956928 }
  0x33   :  { %1938 = dma.done.wait [#allocation10], 256  }
  0x34   :  { %1939 = vsyncadd [#allocation10], 4294967040  ;;  %v1950_v0 = vmov 0.0   ;;  %vm1951_vm0 = vmmov 0   ;;  %v74_v1 = vld [vmem:[#allocation6] sm:$0xff]  ;;  %s1952_s2 = smov 78  }
  0x35   :  { %1510 = vmatprep.subr.bf16.mxu0 %v1950_v0  ;;  %70 = vst [vmem:[#allocation2] sm:$0xff] %v1950_v0  ;;  %1530 = vmatprep.subr.bf16.mxu1 %v1950_v0  ;;  %v1722_v2 = vld [vmem:[#allocation8 + $0x38] sm:$0xff]   ;;  %v1723_v3 = vld [vmem:[#allocation8 + $0x30] sm:$0xff]   ;;  %vm72_vm1 = vcmask 637952   ;;  %v1724_v5 = vld [vmem:[#allocation8 + $0x28] sm:$0xff]   ;;  %vm79_vm2 = vcmask 712304  }
  0x36   :  { %1526 = vmatprep.mubr.msk.bf16.mxu0 %vm1951_vm0, %v1950_v0  ;;  %1546 = vmatprep.mubr.msk.bf16.mxu1 %vm1951_vm0, %v1950_v0  ;;  %v71_v4 = vld [vmem:[#allocation3] sm:$0xff]  ;;  %v1725_v6 = vld [vmem:[#allocation8 + $0x20] sm:$0xff]   ;;  %v1726_v7 = vld [vmem:[#allocation8 + $0x18] sm:$0xff]   ;;  %s1953_s3 = smov [#allocation11]  }
  0x37   :  { %76 = vrot.lane.b32.xlu0 %v74_v1, %s1952_s2  ;;  %1511 = vmatpush3.bf16.msra.mxu0 %v1722_v2  ;;  %73 = vst.msk [vmem:[#allocation2] sm:$0xff] %vm72_vm1, %v71_v4  ;;  %v1727_v8 = vld [vmem:[#allocation8 + $0x10] sm:$0xff]   ;;  %v1728_v9 = vld [vmem:[#allocation8 + $0x8] sm:$0xff]   ;;  %v1729_v10 = vld [vmem:[#allocation8] sm:$0xff]   ;;  %s1319_s11 = sshll.u32 %s1953_s3, 4  ;;  %s1320_s11 = int_to_ptr.vmem [resolvable:$true] %s1319_s11 }
  0x38   :  { %1512 = vmatprep.subr.bf16.mxu0 %v1950_v0  ;;  %v1730_v14 = vld [vmem:[#allocation8 + $0x78] sm:$0xff]   ;;  %v1731_v15 = vld [vmem:[#allocation8 + $0x70] sm:$0xff]   ;;  %v1732_v16 = vld [vmem:[#allocation8 + $0x68] sm:$0xff]   ;;  %s1914_s12 = scalar_lea.vmem %s1320_s11, 128  ;;  %p1919_p7 = scmp.lt.s32.totalorder %s1320_s11, %s1320_s11 }
  0x39   :  { %1531 = vmatpush3.bf16.msra.mxu1 %v1730_v14  ;;  %v1733_v17 = vld [vmem:[#allocation8 + $0x60] sm:$0xff]   ;;  %v1734_v18 = vld [vmem:[#allocation8 + $0x58] sm:$0xff]   ;;  %v1735_v19 = vld [vmem:[#allocation8 + $0x50] sm:$0xff]   ;;  %p1915_p6 = scmp.ne.s32.totalorder %s1320_s11, %s1914_s12  ;;  %p1920_p8 = scmp.lt.s32.totalorder %s1914_s12, %s1914_s12 }
  0x3a   :  { %1532 = vmatprep.subr.bf16.mxu1 %v1950_v0  ;;  %v1736_v20 = vld [vmem:[#allocation8 + $0x48] sm:$0xff]   ;;  %v1737_v21 = vld [vmem:[#allocation8 + $0x40] sm:$0xff]   ;;  %v1738_v43 = vld [vmem:[#allocation8 + $0xb8] sm:$0xff]  }
  0x3b   :  { %1513 = vmatpush3.bf16.msra.mxu0 %v1723_v3  ;;  %v1330_v22 = vld [vmem:[#allocation9] ss:$0 sm:$0xff]  ;;  %v1739_v44 = vld [vmem:[#allocation8 + $0xb0] sm:$0xff]   ;;  %v1740_v45 = vld [vmem:[#allocation8 + $0xa8] sm:$0xff]   ;;  %p1921_p9 = por %p1920_p8, %p1919_p7 }
  0x3c   :  { %1514 = vmatprep.subr.bf16.mxu0 %v1950_v0  ;;  %v1741_v46 = vld [vmem:[#allocation8 + $0xa0] sm:$0xff]   ;;  %v1742_v47 = vld [vmem:[#allocation8 + $0x98] sm:$0xff]   ;;  %v1743_v48 = vld [vmem:[#allocation8 + $0x90] sm:$0xff]  }
  0x3d   :  { %1533 = vmatpush3.bf16.msra.mxu1 %v1731_v15  ;;  %v1744_v49 = vld [vmem:[#allocation8 + $0x88] sm:$0xff]   ;;  %v1745_v50 = vld [vmem:[#allocation8 + $0x80] sm:$0xff]   ;;  %v1750_v14 = vld [vmem:[#allocation8 + $0xd8] sm:$0xff]   ;;  %p1922_p10 = pnand %p1921_p9, %p1915_p6 }
  0x3e   :  { %1534 = vmatprep.subr.bf16.mxu1 %v1950_v0  ;;  %v1339_v51 = vld [vmem:[#allocation9 + $0x1] ss:$0 sm:$0xff]  ;;  %v1751_v15 = vld [vmem:[#allocation8 + $0xd0] sm:$0xff]  }
  0x3f   :  { %1515 = vmatpush3.bf16.msra.mxu0 %v1724_v5 }
  0x40   :  { %1516 = vmatprep.subr.bf16.mxu0 %v1950_v0 }
  0x41   :  { %1535 = vmatpush3.bf16.msra.mxu1 %v1732_v16  ;;  %v1752_v16 = vld [vmem:[#allocation8 + $0xc8] sm:$0xff]  }
  0x42   :  { %1536 = vmatprep.subr.bf16.mxu1 %v1950_v0 }
  0x43   :  { %1517 = vmatpush3.bf16.msra.mxu0 %v1725_v6 }
  0x44   :  { %1518 = vmatprep.subr.bf16.mxu0 %v1950_v0 }
  0x45   :  { %1537 = vmatpush3.bf16.msra.mxu1 %v1733_v17  ;;  %v1753_v17 = vld [vmem:[#allocation8 + $0xc0] sm:$0xff]  }
  0x46   :  { %1538 = vmatprep.subr.bf16.mxu1 %v1950_v0 }
  0x47   :  { %1519 = vmatpush3.bf16.msra.mxu0 %v1726_v7 }
  0x48   :  { %1520 = vmatprep.subr.bf16.mxu0 %v1950_v0 }
  0x49   :  { %1539 = vmatpush3.bf16.msra.mxu1 %v1734_v18  ;;  %v1754_v18 = vld [vmem:[#allocation8 + $0x138] sm:$0xff]  }
  0x4a   :  { %1540 = vmatprep.subr.bf16.mxu1 %v1950_v0 }
  0x4b   :  { %1521 = vmatpush3.bf16.msra.mxu0 %v1727_v8 }
  0x4c   :  { %1522 = vmatprep.subr.bf16.mxu0 %v1950_v0 }
  0x4d   :  { %1541 = vmatpush3.bf16.msra.mxu1 %v1735_v19  ;;  %v1755_v19 = vld [vmem:[#allocation8 + $0x130] sm:$0xff]  }
  0x4e   :  { %1542 = vmatprep.subr.bf16.mxu1 %v1950_v0 }
  0x4f   :  { %1523 = vmatpush3.bf16.msra.mxu0 %v1728_v9  ;;  %v1746_v9 = vld [vmem:[#allocation8 + $0xf8] sm:$0xff]  }
  0x50   :  { %1524 = vmatprep.subr.bf16.mxu0 %v1950_v0 }
  0x51   :  { %1543 = vmatpush3.bf16.msra.mxu1 %v1736_v20  ;;  %v1756_v20 = vld [vmem:[#allocation8 + $0x128] sm:$0xff]  }
  0x52   :  { %1544 = vmatprep.subr.bf16.mxu1 %v1950_v0 }
  0x53   :  { %1525 = vmatpush3.bf16.msra.mxu0 %v1729_v10  ;;  %v1747_v10 = vld [vmem:[#allocation8 + $0xf0] sm:$0xff]  }
  0x54   :  { %1550 = vmatprep.subr.bf16.mxu0 %v1950_v0 }
  0x55   :  { %1545 = vmatpush3.bf16.msra.mxu1 %v1737_v21  ;;  %v1757_v21 = vld [vmem:[#allocation8 + $0x120] sm:$0xff]  }
  0x56   :  { %1570 = vmatprep.subr.bf16.mxu1 %v1950_v0 }
  0xa9   :  { %v77_v11 = vpop.permute.xlu0 %76 }
  0xaa   :  { %80 = vst.msk [vmem:[#allocation2] sm:$0xff] %vm79_vm2, %v77_v11  ;;  %v1748_v11 = vld [vmem:[#allocation8 + $0xe8] sm:$0xff]  }
  0xb1   :  { %v2006_v12 = vld [vmem:[#allocation2] sm:$0xff] }
  0xb2   :  { %v82_v13 = vpack.c.bf16 %v2006_v12, %v2006_v12 }
  0xb4   :  { %1527 = vmatmul.mubr.bf16.vlgmr.msra.gmra.mxu0 %v82_v13  ;;  %v1749_v13 = vld [vmem:[#allocation8 + $0xe0] sm:$0xff]  }
  0xb5   :  { %1566 = vmatprep.mubr.msk.bf16.mxu0 %vm1951_vm0, %v1950_v0  ;;  %1551 = vmatpush3.bf16.msra.mxu0 %v1738_v43 }
  0xb6   :  { %1552 = vmatprep.subr.bf16.mxu0 %v1950_v0 }
  0xb9   :  { %1553 = vmatpush3.bf16.msra.mxu0 %v1739_v44 }
  0xba   :  { %1554 = vmatprep.subr.bf16.mxu0 %v1950_v0 }
  0xbd   :  { %1555 = vmatpush3.bf16.msra.mxu0 %v1740_v45  ;;  %v1760_v45 = vld [vmem:[#allocation8 + $0x108] sm:$0xff]  }
  0xbe   :  { %1556 = vmatprep.subr.bf16.mxu0 %v1950_v0 }
  0xc1   :  { %1557 = vmatpush3.bf16.msra.mxu0 %v1741_v46  ;;  %v1761_v46 = vld [vmem:[#allocation8 + $0x100] sm:$0xff]  }
  0xc2   :  { %1558 = vmatprep.subr.bf16.mxu0 %v1950_v0 }
  0xc5   :  { %1559 = vmatpush3.bf16.msra.mxu0 %v1742_v47  ;;  %v1357_v47 = vld [vmem:[#allocation9 + $0x3] ss:$0 sm:$0xff] }
  0xc6   :  { %1560 = vmatprep.subr.bf16.mxu0 %v1950_v0 }
  0xc9   :  { %1561 = vmatpush3.bf16.msra.mxu0 %v1743_v48 }
  0xca   :  { %1562 = vmatprep.subr.bf16.mxu0 %v1950_v0 }
  0xcd   :  { %1563 = vmatpush3.bf16.msra.mxu0 %v1744_v49 }
  0xce   :  { %1564 = vmatprep.subr.bf16.mxu0 %v1950_v0 }
  0xd1   :  { %1565 = vmatpush3.bf16.msra.mxu0 %v1745_v50 }
  0xd2   :  { %1590 = vmatprep.subr.bf16.mxu0 %v1950_v0 }
 0x174   :  { %v186_v23 = vpop.f32.mrf.mxu0 }
 0x175   :  { %v187_v24 = vadd.f32 %v1330_v22, %v186_v23  ;;  %v1758_v22 = vld [vmem:[#allocation8 + $0x118] sm:$0xff]   ;;  %v1759_v23 = vld [vmem:[#allocation8 + $0x110] sm:$0xff]  }
 0x176   :  { %v1528_v25 = vpop.f32.mrf.mxu0 }
 0x177   :  { %v193_v26 = vand.u32 2147483647, %v187_v24  ;;  %v192_v39 = vmax.f32 %v187_v24, 0.0  ;;  %v1348_v24 = vld [vmem:[#allocation9 + $0x2] ss:$0 sm:$0xff] }
 0x178   :  { %v189_v27 = vpop.f32.mrf.mxu0 }
 0x179   :  { %v194_v28 = vsub.f32 0.0, %v193_v26 }
 0x17a   :  { %v1529_v29 = vpop.f32.mrf.mxu0 }
 0x17b   :  { %v195_v30 = vmul.f32 1.442695, %v194_v28 }
 0x17d   :  { %1802 = vpow2.f32 %v195_v30 }
 0x18a   :  { %v1803_v31 = vpop.eup %1802 }
 0x18b   :  { %v197_v32 = vadd.f32 1.0, %v1803_v31  ;;  %v200_v33 = vmul.f32 -0.5, %v1803_v31  ;;  %v203_v35 = vand.u32 2147483647, %v1803_v31 }
 0x18d   :  { %1804 = vlog2.f32 %v197_v32  ;;  %v201_v34 = vadd.f32 1.0, %v200_v33  ;;  %vm204_vm3 = vcmp.lt.f32.partialorder %v203_v35, 0.0004427343 }
 0x18f   :  { %v202_v38 = vmul.f32 %v1803_v31, %v201_v34 }
 0x19a   :  { %v1805_v36 = vpop.eup %1804 }
 0x19b   :  { %v199_v37 = vmul.f32 0.6931472, %v1805_v36 }
 0x19d   :  { %v205_v40 = vsel %vm204_vm3, %v202_v38, %v199_v37 }
 0x19e   :  { %v206_v41 = vadd.f32 %v205_v40, %v192_v39 }
 0x1a0   :  { %v207_v42 = vpack.c.bf16 %v206_v41, %v206_v41 }
 0x1a2   :  { %1547 = vmatmul.mubr.bf16.vlgmr.msra.gmra.mxu1 %v207_v42 }
 0x1a3   :  { %1586 = vmatprep.mubr.msk.bf16.mxu1 %vm1951_vm0, %v1950_v0  ;;  %1571 = vmatpush3.bf16.msra.mxu1 %v1746_v9 }
 0x1a4   :  { %1572 = vmatprep.subr.bf16.mxu1 %v1950_v0 }
 0x1a7   :  { %1573 = vmatpush3.bf16.msra.mxu1 %v1747_v10 }
 0x1a8   :  { %1574 = vmatprep.subr.bf16.mxu1 %v1950_v0 }
 0x1ab   :  { %1575 = vmatpush3.bf16.msra.mxu1 %v1748_v11 }
 0x1ac   :  { %1576 = vmatprep.subr.bf16.mxu1 %v1950_v0 }
 0x1af   :  { %1577 = vmatpush3.bf16.msra.mxu1 %v1749_v13 }
 0x1b0   :  { %1578 = vmatprep.subr.bf16.mxu1 %v1950_v0 }
 0x1b3   :  { %1579 = vmatpush3.bf16.msra.mxu1 %v1750_v14 }
 0x1b4   :  { %1580 = vmatprep.subr.bf16.mxu1 %v1950_v0 }
 0x1b7   :  { %1581 = vmatpush3.bf16.msra.mxu1 %v1751_v15 }
 0x1b8   :  { %1582 = vmatprep.subr.bf16.mxu1 %v1950_v0 }
 0x1bb   :  { %1583 = vmatpush3.bf16.msra.mxu1 %v1752_v16 }
 0x1bc   :  { %1584 = vmatprep.subr.bf16.mxu1 %v1950_v0 }
 0x1bf   :  { %1585 = vmatpush3.bf16.msra.mxu1 %v1753_v17 }
 0x1c0   :  { %1610 = vmatprep.subr.bf16.mxu1 %v1950_v0 }
 0x262   :  { %v312_v52 = vpop.f32.mrf.mxu1 }
 0x263   :  { %v313_v53 = vadd.f32 %v1339_v51, %v312_v52 }
 0x264   :  { %v1548_v54 = vpop.f32.mrf.mxu1 }
 0x265   :  { %v319_v55 = vand.u32 2147483647, %v313_v53  ;;  %v318_v5 = vmax.f32 %v313_v53, 0.0 }
 0x266   :  { %v315_v56 = vpop.f32.mrf.mxu1 }
 0x267   :  { %v320_v57 = vsub.f32 0.0, %v319_v55  ;;  %v1762_v55 = vld [vmem:[#allocation8 + $0x178] sm:$0xff]   ;;  %v1763_v56 = vld [vmem:[#allocation8 + $0x170] sm:$0xff]  }
 0x268   :  { %v1549_v58 = vpop.f32.mrf.mxu1 }
 0x269   :  { %v321_v59 = vmul.f32 1.442695, %v320_v57  ;;  %v1764_v57 = vld [vmem:[#allocation8 + $0x168] sm:$0xff]   ;;  %v1766_v58 = vld [vmem:[#allocation8 + $0x158] sm:$0xff]  }
 0x26b   :  { %1806 = vpow2.f32 %v321_v59  ;;  %v1767_v59 = vld [vmem:[#allocation8 + $0x150] sm:$0xff]  }
 0x278   :  { %v1807_v60 = vpop.eup %1806 }
 0x279   :  { %v323_v61 = vadd.f32 1.0, %v1807_v60  ;;  %v326_v62 = vmul.f32 -0.5, %v1807_v60  ;;  %v329_v1 = vand.u32 2147483647, %v1807_v60 }
 0x27b   :  { %1808 = vlog2.f32 %v323_v61  ;;  %v327_v63 = vadd.f32 1.0, %v326_v62  ;;  %vm330_vm4 = vcmp.lt.f32.partialorder %v329_v1, 0.0004427343  ;;  %v1769_v61 = vld [vmem:[#allocation8 + $0x140] sm:$0xff]  }
 0x27c   :  { %v1366_v62 = vld [vmem:[#allocation9 + $0x4] ss:$0 sm:$0xff] }
 0x27d   :  { %v328_v4 = vmul.f32 %v1807_v60, %v327_v63  ;;  %v1768_v60 = vld [vmem:[#allocation8 + $0x148] sm:$0xff]  }
 0x288   :  { %v1809_v2 = vpop.eup %1808 }
 0x289   :  { %v325_v3 = vmul.f32 0.6931472, %v1809_v2 }
 0x28b   :  { %v331_v6 = vsel %vm330_vm4, %v328_v4, %v325_v3 }
 0x28c   :  { %v332_v7 = vadd.f32 %v331_v6, %v318_v5 }
 0x28e   :  { %v333_v8 = vpack.c.bf16 %v332_v7, %v332_v7 }
 0x290   :  { %1567 = vmatmul.mubr.bf16.vlgmr.msra.gmra.mxu0 %v333_v8 }
 0x291   :  { %1606 = vmatprep.mubr.msk.bf16.mxu0 %vm1951_vm0, %v1950_v0  ;;  %1591 = vmatpush3.bf16.msra.mxu0 %v1754_v18 }
 0x292   :  { %1592 = vmatprep.subr.bf16.mxu0 %v1950_v0 }
 0x295   :  { %1593 = vmatpush3.bf16.msra.mxu0 %v1755_v19 }
 0x296   :  { %1594 = vmatprep.subr.bf16.mxu0 %v1950_v0 }
 0x299   :  { %1595 = vmatpush3.bf16.msra.mxu0 %v1756_v20 }
 0x29a   :  { %1596 = vmatprep.subr.bf16.mxu0 %v1950_v0 }
 0x29d   :  { %1597 = vmatpush3.bf16.msra.mxu0 %v1757_v21  ;;  %v1770_v21 = vld [vmem:[#allocation8 + $0x1b8] sm:$0xff]  }
 0x29e   :  { %1598 = vmatprep.subr.bf16.mxu0 %v1950_v0 }
 0x2a1   :  { %1599 = vmatpush3.bf16.msra.mxu0 %v1758_v22  ;;  %v1771_v22 = vld [vmem:[#allocation8 + $0x1b0] sm:$0xff]  }
 0x2a2   :  { %1600 = vmatprep.subr.bf16.mxu0 %v1950_v0 }
 0x2a5   :  { %1601 = vmatpush3.bf16.msra.mxu0 %v1759_v23  ;;  %v1772_v23 = vld [vmem:[#allocation8 + $0x1a8] sm:$0xff]  }
 0x2a6   :  { %1602 = vmatprep.subr.bf16.mxu0 %v1950_v0 }
 0x2a9   :  { %1603 = vmatpush3.bf16.msra.mxu0 %v1760_v45 }
 0x2aa   :  { %1604 = vmatprep.subr.bf16.mxu0 %v1950_v0 }
 0x2ad   :  { %1605 = vmatpush3.bf16.msra.mxu0 %v1761_v46 }
 0x2ae   :  { %1630 = vmatprep.subr.bf16.mxu0 %v1950_v0 }
 0x350   :  { %v438_v25 = vpop.f32.mrf.mxu0 }
 0x351   :  { %v439_v26 = vadd.f32 %v1348_v24, %v438_v25  ;;  %v1773_v24 = vld [vmem:[#allocation8 + $0x1a0] sm:$0xff]   ;;  %v1774_v25 = vld [vmem:[#allocation8 + $0x198] sm:$0xff]  }
 0x352   :  { %v1568_v27 = vpop.f32.mrf.mxu0 }
 0x353   :  { %v445_v28 = vand.u32 2147483647, %v439_v26  ;;  %v444_v41 = vmax.f32 %v439_v26, 0.0  ;;  %v1775_v26 = vld [vmem:[#allocation8 + $0x190] sm:$0xff]   ;;  %v1776_v27 = vld [vmem:[#allocation8 + $0x188] sm:$0xff]  }
 0x354   :  { %v441_v29 = vpop.f32.mrf.mxu0 }
 0x355   :  { %v446_v30 = vsub.f32 0.0, %v445_v28  ;;  %v1777_v28 = vld [vmem:[#allocation8 + $0x180] sm:$0xff]  }
 0x356   :  { %v1569_v31 = vpop.f32.mrf.mxu0  ;;  %v1375_v29 = vld [vmem:[#allocation9 + $0x5] ss:$0 sm:$0xff] }
 0x357   :  { %v447_v32 = vmul.f32 1.442695, %v446_v30 }
 0x359   :  { %1810 = vpow2.f32 %v447_v32 }
 0x366   :  { %v1811_v33 = vpop.eup %1810 }
 0x367   :  { %v449_v34 = vadd.f32 1.0, %v1811_v33  ;;  %v452_v35 = vmul.f32 -0.5, %v1811_v33  ;;  %v455_v37 = vand.u32 2147483647, %v1811_v33 }
 0x369   :  { %1812 = vlog2.f32 %v449_v34  ;;  %v453_v36 = vadd.f32 1.0, %v452_v35  ;;  %vm456_vm5 = vcmp.lt.f32.partialorder %v455_v37, 0.0004427343 }
 0x36b   :  { %v454_v40 = vmul.f32 %v1811_v33, %v453_v36 }
 0x376   :  { %v1813_v38 = vpop.eup %1812 }
 0x377   :  { %v451_v39 = vmul.f32 0.6931472, %v1813_v38 }
 0x379   :  { %v457_v42 = vsel %vm456_vm5, %v454_v40, %v451_v39 }
 0x37a   :  { %v458_v43 = vadd.f32 %v457_v42, %v444_v41 }
 0x37c   :  { %v459_v44 = vpack.c.bf16 %v458_v43, %v458_v43 }
 0x37e   :  { %1587 = vmatmul.mubr.bf16.vlgmr.msra.gmra.mxu1 %v459_v44 }
 0x37f   :  { %1626 = vmatprep.mubr.msk.bf16.mxu1 %vm1951_vm0, %v1950_v0  ;;  %1611 = vmatpush3.bf16.msra.mxu1 %v1762_v55  ;;  %v1783_v55 = vld [vmem:[#allocation8 + $0x1d0] sm:$0xff]  }
 0x380   :  { %1612 = vmatprep.subr.bf16.mxu1 %v1950_v0 }
 0x383   :  { %1613 = vmatpush3.bf16.msra.mxu1 %v1763_v56  ;;  %v1784_v56 = vld [vmem:[#allocation8 + $0x1c8] sm:$0xff]  }
 0x384   :  { %1614 = vmatprep.subr.bf16.mxu1 %v1950_v0 }
 0x387   :  { %1615 = vmatpush3.bf16.msra.mxu1 %v1764_v57  ;;  %v1785_v57 = vld [vmem:[#allocation8 + $0x1c0] sm:$0xff]  }
 0x388   :  { %1616 = vmatprep.subr.bf16.mxu1 %v1950_v0 }
 0x43e   :  { %v564_v48 = vpop.f32.mrf.mxu1 }
 0x43f   :  { %v565_v49 = vadd.f32 %v1357_v47, %v564_v48 }
 0x440   :  { %v1588_v50 = vpop.f32.mrf.mxu1 }
 0x441   :  { %v570_v51 = vadd.f32 %v565_v49, %v2006_v12  ;;  %v1765_v12 = vld [vmem:[#allocation8 + $0x160] sm:$0xff]   ;;  %v1778_v50 = vld [vmem:[#allocation8 + $0x1f8] sm:$0xff]  }
 0x442   :  { %v567_v52 = vpop.f32.mrf.mxu1  ;;  %1617 = vmatpush3.bf16.msra.mxu1 %v1765_v12  ;;  %v1384_v12 = vld [vmem:[#allocation9 + $0x6] ss:$0 sm:$0xff] }
 0x443   :  { %v571_v53 = vpack.c.bf16 %v570_v51, %v570_v51  ;;  %1618 = vmatprep.subr.bf16.mxu1 %v1950_v0  ;;  %v1779_v51 = vld [vmem:[#allocation8 + $0x1f0] sm:$0xff]   ;;  %v1780_v52 = vld [vmem:[#allocation8 + $0x1e8] sm:$0xff]  }
 0x444   :  { %v1589_v54 = vpop.f32.mrf.mxu1 }
 0x445   :  { %1607 = vmatmul.mubr.bf16.vlgmr.msra.gmra.mxu0 %v571_v53  ;;  %v1781_v53 = vld [vmem:[#allocation8 + $0x1e0] sm:$0xff]   ;;  %v1782_v54 = vld [vmem:[#allocation8 + $0x1d8] sm:$0xff]  }
 0x446   :  { %1646 = vmatprep.mubr.msk.bf16.mxu0 %vm1951_vm0, %v1950_v0  ;;  %1619 = vmatpush3.bf16.msra.mxu1 %v1766_v58 }
 0x447   :  { %1620 = vmatprep.subr.bf16.mxu1 %v1950_v0  ;;  %1631 = vmatpush3.bf16.msra.mxu0 %v1770_v21  ;;  %v1791_v21 = vld [vmem:[#allocation8 + $0x210] sm:$0xff]  }
 0x448   :  { %1632 = vmatprep.subr.bf16.mxu0 %v1950_v0 }
 0x44a   :  { %1621 = vmatpush3.bf16.msra.mxu1 %v1767_v59 }
 0x44b   :  { %1622 = vmatprep.subr.bf16.mxu1 %v1950_v0  ;;  %1633 = vmatpush3.bf16.msra.mxu0 %v1771_v22  ;;  %v1792_v22 = vld [vmem:[#allocation8 + $0x208] sm:$0xff]  }
 0x44c   :  { %1634 = vmatprep.subr.bf16.mxu0 %v1950_v0 }
 0x44e   :  { %1623 = vmatpush3.bf16.msra.mxu1 %v1768_v60 }
 0x44f   :  { %1624 = vmatprep.subr.bf16.mxu1 %v1950_v0  ;;  %1635 = vmatpush3.bf16.msra.mxu0 %v1772_v23  ;;  %v1793_v23 = vld [vmem:[#allocation8 + $0x200] sm:$0xff]  }
 0x450   :  { %1636 = vmatprep.subr.bf16.mxu0 %v1950_v0 }
 0x452   :  { %1625 = vmatpush3.bf16.msra.mxu1 %v1769_v61 }
 0x453   :  { %1650 = vmatprep.subr.bf16.mxu1 %v1950_v0  ;;  %1637 = vmatpush3.bf16.msra.mxu0 %v1773_v24  ;;  %v1393_v24 = vld [vmem:[#allocation9 + $0x7] ss:$0 sm:$0xff] }
 0x454   :  { %1638 = vmatprep.subr.bf16.mxu0 %v1950_v0 }
 0x457   :  { %1639 = vmatpush3.bf16.msra.mxu0 %v1774_v25 }
 0x458   :  { %1640 = vmatprep.subr.bf16.mxu0 %v1950_v0 }
 0x45b   :  { %1641 = vmatpush3.bf16.msra.mxu0 %v1775_v26 }
 0x45c   :  { %1642 = vmatprep.subr.bf16.mxu0 %v1950_v0 }
 0x45f   :  { %1643 = vmatpush3.bf16.msra.mxu0 %v1776_v27 }
 0x460   :  { %1644 = vmatprep.subr.bf16.mxu0 %v1950_v0 }
 0x463   :  { %1645 = vmatpush3.bf16.msra.mxu0 %v1777_v28 }
 0x464   :  { %1670 = vmatprep.subr.bf16.mxu0 %v1950_v0 }
 0x505   :  { %v676_v63 = vpop.f32.mrf.mxu0 }
 0x506   :  { %v677_v1 = vadd.f32 %v1366_v62, %v676_v63 }
 0x507   :  { %v1608_v2 = vpop.f32.mrf.mxu0 }
 0x508   :  { %v683_v3 = vand.u32 2147483647, %v677_v1  ;;  %v682_v17 = vmax.f32 %v677_v1, 0.0 }
 0x509   :  { %v679_v4 = vpop.f32.mrf.mxu0 }
 0x50a   :  { %v684_v5 = vsub.f32 0.0, %v683_v3 }
 0x50b   :  { %v1609_v6 = vpop.f32.mrf.mxu0 }
 0x50c   :  { %v685_v7 = vmul.f32 1.442695, %v684_v5 }
 0x50e   :  { %1814 = vpow2.f32 %v685_v7 }
 0x51b   :  { %v1815_v8 = vpop.eup %1814 }
 0x51c   :  { %v687_v9 = vadd.f32 1.0, %v1815_v8  ;;  %v690_v10 = vmul.f32 -0.5, %v1815_v8  ;;  %v693_v13 = vand.u32 2147483647, %v1815_v8 }
 0x51e   :  { %1816 = vlog2.f32 %v687_v9  ;;  %v691_v11 = vadd.f32 1.0, %v690_v10  ;;  %vm694_vm6 = vcmp.lt.f32.partialorder %v693_v13, 0.0004427343 }
 0x520   :  { %v692_v16 = vmul.f32 %v1815_v8, %v691_v11 }
 0x52b   :  { %v1817_v14 = vpop.eup %1816 }
 0x52c   :  { %v689_v15 = vmul.f32 0.6931472, %v1817_v14 }
 0x52e   :  { %v695_v18 = vsel %vm694_vm6, %v692_v16, %v689_v15  ;;  %v1786_v16 = vld [vmem:[#allocation8 + $0x238] sm:$0xff]  }
 0x52f   :  { %v696_v19 = vadd.f32 %v695_v18, %v682_v17  ;;  %v1787_v17 = vld [vmem:[#allocation8 + $0x230] sm:$0xff]   ;;  %v1788_v18 = vld [vmem:[#allocation8 + $0x228] sm:$0xff]  }
 0x531   :  { %v697_v20 = vpack.c.bf16 %v696_v19, %v696_v19  ;;  %v1789_v19 = vld [vmem:[#allocation8 + $0x220] sm:$0xff]  }
 0x533   :  { %1627 = vmatmul.mubr.bf16.vlgmr.msra.gmra.mxu1 %v697_v20  ;;  %v1790_v20 = vld [vmem:[#allocation8 + $0x218] sm:$0xff]  }
 0x534   :  { %1666 = vmatprep.mubr.msk.bf16.mxu1 %vm1951_vm0, %v1950_v0  ;;  %1651 = vmatpush3.bf16.msra.mxu1 %v1778_v50  ;;  %v1799_v50 = vld [vmem:[#allocation8 + $0x250] sm:$0xff]  }
 0x535   :  { %1652 = vmatprep.subr.bf16.mxu1 %v1950_v0 }
 0x538   :  { %1653 = vmatpush3.bf16.msra.mxu1 %v1779_v51  ;;  %v1800_v51 = vld [vmem:[#allocation8 + $0x248] sm:$0xff]  }
 0x539   :  { %1654 = vmatprep.subr.bf16.mxu1 %v1950_v0 }
 0x53c   :  { %1655 = vmatpush3.bf16.msra.mxu1 %v1780_v52  ;;  %v1801_v52 = vld [vmem:[#allocation8 + $0x240] sm:$0xff]  }
 0x53d   :  { %1656 = vmatprep.subr.bf16.mxu1 %v1950_v0 }
 0x540   :  { %1657 = vmatpush3.bf16.msra.mxu1 %v1781_v53  ;;  %v1402_v53 = vld [vmem:[#allocation9 + $0x8] ss:$0 sm:$0xff] }
 0x541   :  { %1658 = vmatprep.subr.bf16.mxu1 %v1950_v0 }
 0x544   :  { %1659 = vmatpush3.bf16.msra.mxu1 %v1782_v54 }
 0x545   :  { %1660 = vmatprep.subr.bf16.mxu1 %v1950_v0 }
 0x548   :  { %1661 = vmatpush3.bf16.msra.mxu1 %v1783_v55 }
 0x549   :  { %1662 = vmatprep.subr.bf16.mxu1 %v1950_v0 }
 0x54c   :  { %1663 = vmatpush3.bf16.msra.mxu1 %v1784_v56 }
 0x54d   :  { %1664 = vmatprep.subr.bf16.mxu1 %v1950_v0 }
 0x550   :  { %1665 = vmatpush3.bf16.msra.mxu1 %v1785_v57 }
 0x551   :  { %1690 = vmatprep.subr.bf16.mxu1 %v1950_v0 }
 0x5f3   :  { %v802_v30 = vpop.f32.mrf.mxu1 }
 0x5f4   :  { %v803_v31 = vadd.f32 %v1375_v29, %v802_v30 }
 0x5f5   :  { %v1628_v32 = vpop.f32.mrf.mxu1 }
 0x5f6   :  { %v809_v33 = vand.u32 2147483647, %v803_v31  ;;  %v808_v46 = vmax.f32 %v803_v31, 0.0 }
 0x5f7   :  { %v805_v34 = vpop.f32.mrf.mxu1 }
 0x5f8   :  { %v810_v35 = vsub.f32 0.0, %v809_v33 }
 0x5f9   :  { %v1629_v36 = vpop.f32.mrf.mxu1 }
 0x5fa   :  { %v811_v37 = vmul.f32 1.442695, %v810_v35 }
 0x5fc   :  { %1818 = vpow2.f32 %v811_v37 }
 0x609   :  { %v1819_v38 = vpop.eup %1818 }
 0x60a   :  { %v813_v39 = vadd.f32 1.0, %v1819_v38  ;;  %v816_v40 = vmul.f32 -0.5, %v1819_v38  ;;  %v819_v42 = vand.u32 2147483647, %v1819_v38 }
 0x60c   :  { %1820 = vlog2.f32 %v813_v39  ;;  %v817_v41 = vadd.f32 1.0, %v816_v40  ;;  %vm820_vm7 = vcmp.lt.f32.partialorder %v819_v42, 0.0004427343 }
 0x60e   :  { %v818_v45 = vmul.f32 %v1819_v38, %v817_v41 }
 0x619   :  { %v1821_v43 = vpop.eup %1820 }
 0x61a   :  { %v815_v44 = vmul.f32 0.6931472, %v1821_v43 }
 0x61c   :  { %v821_v47 = vsel %vm820_vm7, %v818_v45, %v815_v44  ;;  %v1794_v45 = vld [vmem:[#allocation8 + $0x278] sm:$0xff]  }
 0x61d   :  { %v822_v48 = vadd.f32 %v821_v47, %v808_v46  ;;  %v1795_v46 = vld [vmem:[#allocation8 + $0x270] sm:$0xff]   ;;  %v1796_v47 = vld [vmem:[#allocation8 + $0x268] sm:$0xff]  }
 0x61f   :  { %v823_v49 = vpack.c.bf16 %v822_v48, %v822_v48  ;;  %v1797_v48 = vld [vmem:[#allocation8 + $0x260] sm:$0xff]  }
 0x621   :  { %1647 = vmatmul.mubr.bf16.vlgmr.msra.gmra.mxu0 %v823_v49  ;;  %v1798_v49 = vld [vmem:[#allocation8 + $0x258] sm:$0xff]  }
 0x622   :  { %1686 = vmatprep.mubr.msk.bf16.mxu0 %vm1951_vm0, %v1950_v0  ;;  %1671 = vmatpush3.bf16.msra.mxu0 %v1786_v16 }
 0x623   :  { %1672 = vmatprep.subr.bf16.mxu0 %v1950_v0 }
 0x626   :  { %1673 = vmatpush3.bf16.msra.mxu0 %v1787_v17 }
 0x627   :  { %1674 = vmatprep.subr.bf16.mxu0 %v1950_v0 }
 0x62a   :  { %1675 = vmatpush3.bf16.msra.mxu0 %v1788_v18 }
 0x62b   :  { %1676 = vmatprep.subr.bf16.mxu0 %v1950_v0 }
 0x62e   :  { %1677 = vmatpush3.bf16.msra.mxu0 %v1789_v19 }
 0x62f   :  { %1678 = vmatprep.subr.bf16.mxu0 %v1950_v0 }
 0x632   :  { %1679 = vmatpush3.bf16.msra.mxu0 %v1790_v20 }
 0x633   :  { %1680 = vmatprep.subr.bf16.mxu0 %v1950_v0 }
 0x636   :  { %1681 = vmatpush3.bf16.msra.mxu0 %v1791_v21 }
 0x637   :  { %1682 = vmatprep.subr.bf16.mxu0 %v1950_v0 }
 0x63a   :  { %1683 = vmatpush3.bf16.msra.mxu0 %v1792_v22 }
 0x63b   :  { %1684 = vmatprep.subr.bf16.mxu0 %v1950_v0 }
 0x63e   :  { %1685 = vmatpush3.bf16.msra.mxu0 %v1793_v23 }
 0x6e1   :  { %v928_v58 = vpop.f32.mrf.mxu0 }
 0x6e2   :  { %v929_v59 = vadd.f32 %v1384_v12, %v928_v58 }
 0x6e3   :  { %v1648_v60 = vpop.f32.mrf.mxu0 }
 0x6e4   :  { %v935_v61 = vand.u32 2147483647, %v929_v59  ;;  %v934_v11 = vmax.f32 %v929_v59, 0.0 }
 0x6e5   :  { %v931_v62 = vpop.f32.mrf.mxu0 }
 0x6e6   :  { %v936_v63 = vsub.f32 0.0, %v935_v61 }
 0x6e7   :  { %v1649_v1 = vpop.f32.mrf.mxu0 }
 0x6e8   :  { %v937_v2 = vmul.f32 1.442695, %v936_v63 }
 0x6ea   :  { %1822 = vpow2.f32 %v937_v2 }
 0x6f7   :  { %v1823_v3 = vpop.eup %1822 }
 0x6f8   :  { %v939_v4 = vadd.f32 1.0, %v1823_v3  ;;  %v942_v5 = vmul.f32 -0.5, %v1823_v3  ;;  %v945_v7 = vand.u32 2147483647, %v1823_v3 }
 0x6fa   :  { %1824 = vlog2.f32 %v939_v4  ;;  %v943_v6 = vadd.f32 1.0, %v942_v5  ;;  %vm946_vm8 = vcmp.lt.f32.partialorder %v945_v7, 0.0004427343 }
 0x6fc   :  { %v944_v10 = vmul.f32 %v1823_v3, %v943_v6 }
 0x707   :  { %v1825_v8 = vpop.eup %1824 }
 0x708   :  { %v941_v9 = vmul.f32 0.6931472, %v1825_v8 }
 0x70a   :  { %v947_v13 = vsel %vm946_vm8, %v944_v10, %v941_v9  ;;  %v1411_v9 = vld [vmem:[#allocation9 + $0x9] ss:$0 sm:$0xff] }
 0x70b   :  { %v948_v14 = vadd.f32 %v947_v13, %v934_v11 }
 0x70d   :  { %v949_v15 = vpack.c.bf16 %v948_v14, %v948_v14 }
 0x70f   :  { %1667 = vmatmul.mubr.bf16.vlgmr.msra.gmra.mxu1 %v949_v15 }
 0x710   :  { %1706 = vmatprep.mubr.msk.bf16.mxu1 %vm1951_vm0, %v1950_v0  ;;  %1691 = vmatpush3.bf16.msra.mxu1 %v1794_v45 }
 0x711   :  { %1692 = vmatprep.subr.bf16.mxu1 %v1950_v0 }
 0x714   :  { %1693 = vmatpush3.bf16.msra.mxu1 %v1795_v46 }
 0x715   :  { %1694 = vmatprep.subr.bf16.mxu1 %v1950_v0 }
 0x718   :  { %1695 = vmatpush3.bf16.msra.mxu1 %v1796_v47 }
 0x719   :  { %1696 = vmatprep.subr.bf16.mxu1 %v1950_v0 }
 0x71c   :  { %1697 = vmatpush3.bf16.msra.mxu1 %v1797_v48 }
 0x71d   :  { %1698 = vmatprep.subr.bf16.mxu1 %v1950_v0 }
 0x720   :  { %1699 = vmatpush3.bf16.msra.mxu1 %v1798_v49 }
 0x721   :  { %1700 = vmatprep.subr.bf16.mxu1 %v1950_v0 }
 0x724   :  { %1701 = vmatpush3.bf16.msra.mxu1 %v1799_v50 }
 0x725   :  { %1702 = vmatprep.subr.bf16.mxu1 %v1950_v0 }
 0x728   :  { %1703 = vmatpush3.bf16.msra.mxu1 %v1800_v51 }
 0x729   :  { %1704 = vmatprep.subr.bf16.mxu1 %v1950_v0 }
 0x72c   :  { %1705 = vmatpush3.bf16.msra.mxu1 %v1801_v52 }
 0x7cf   :  { %v1054_v25 = vpop.f32.mrf.mxu1 }
 0x7d0   :  { %v1055_v26 = vadd.f32 %v1393_v24, %v1054_v25 }
 0x7d1   :  { %v1668_v27 = vpop.f32.mrf.mxu1 }
 0x7d2   :  { %v1061_v28 = vand.u32 2147483647, %v1055_v26  ;;  %v1060_v41 = vmax.f32 %v1055_v26, 0.0 }
 0x7d3   :  { %v1057_v29 = vpop.f32.mrf.mxu1 }
 0x7d4   :  { %v1062_v30 = vsub.f32 0.0, %v1061_v28 }
 0x7d5   :  { %v1669_v31 = vpop.f32.mrf.mxu1 }
 0x7d6   :  { %v1063_v32 = vmul.f32 1.442695, %v1062_v30 }
 0x7d8   :  { %1826 = vpow2.f32 %v1063_v32 }
 0x7e5   :  { %v1827_v33 = vpop.eup %1826 }
 0x7e6   :  { %v1065_v34 = vadd.f32 1.0, %v1827_v33  ;;  %v1068_v35 = vmul.f32 -0.5, %v1827_v33  ;;  %v1071_v37 = vand.u32 2147483647, %v1827_v33 }
 0x7e8   :  { %1828 = vlog2.f32 %v1065_v34  ;;  %v1069_v36 = vadd.f32 1.0, %v1068_v35  ;;  %vm1072_vm9 = vcmp.lt.f32.partialorder %v1071_v37, 0.0004427343 }
 0x7ea   :  { %v1070_v40 = vmul.f32 %v1827_v33, %v1069_v36 }
 0x7f5   :  { %v1829_v38 = vpop.eup %1828 }
 0x7f6   :  { %v1067_v39 = vmul.f32 0.6931472, %v1829_v38 }
 0x7f8   :  { %v1073_v42 = vsel %vm1072_vm9, %v1070_v40, %v1067_v39 }
 0x7f9   :  { %v1074_v43 = vadd.f32 %v1073_v42, %v1060_v41 }
 0x7fb   :  { %v1075_v44 = vpack.c.bf16 %v1074_v43, %v1074_v43 }
 0x7fd   :  { %1687 = vmatmul.mubr.bf16.vlgmr.msra.gmra.mxu0 %v1075_v44 }
 0x8bd   :  { %v1180_v54 = vpop.f32.mrf.mxu0 }
 0x8be   :  { %v1181_v55 = vadd.f32 %v1402_v53, %v1180_v54 }
 0x8bf   :  { %v1688_v56 = vpop.f32.mrf.mxu0 }
 0x8c0   :  { %v1187_v57 = vand.u32 2147483647, %v1181_v55  ;;  %v1186_v5 = vmax.f32 %v1181_v55, 0.0 }
 0x8c1   :  { %v1183_v12 = vpop.f32.mrf.mxu0 }
 0x8c2   :  { %v1188_v58 = vsub.f32 0.0, %v1187_v57 }
 0x8c3   :  { %v1689_v59 = vpop.f32.mrf.mxu0 }
 0x8c4   :  { %v1189_v60 = vmul.f32 1.442695, %v1188_v58 }
 0x8c6   :  { %1830 = vpow2.f32 %v1189_v60 }
 0x8d3   :  { %v1831_v61 = vpop.eup %1830 }
 0x8d4   :  { %v1191_v62 = vadd.f32 1.0, %v1831_v61  ;;  %v1194_v63 = vmul.f32 -0.5, %v1831_v61  ;;  %v1197_v2 = vand.u32 2147483647, %v1831_v61 }
 0x8d6   :  { %1832 = vlog2.f32 %v1191_v62  ;;  %v1195_v1 = vadd.f32 1.0, %v1194_v63  ;;  %vm1198_vm10 = vcmp.lt.f32.partialorder %v1197_v2, 0.0004427343 }
 0x8d8   :  { %v1196_v4 = vmul.f32 %v1831_v61, %v1195_v1 }
 0x8e3   :  { %v1833_v3 = vpop.eup %1832 }
 0x8e4   :  { %v1193_v0 = vmul.f32 0.6931472, %v1833_v3 }
 0x8e6   :  { %v1199_v6 = vsel %vm1198_vm10, %v1196_v4, %v1193_v0 }
 0x8e7   :  { %v1200_v7 = vadd.f32 %v1199_v6, %v1186_v5 }
 0x8e9   :  { %v1201_v8 = vpack.c.bf16 %v1200_v7, %v1200_v7 }
 0x8eb   :  { %1707 = vmatmul.mubr.bf16.vlgmr.msra.gmra.mxu1 %v1201_v8 }
 0x9ab   :  { %v1306_v10 = vpop.f32.mrf.mxu1 }
 0x9ac   :  { %v1307_v11 = vadd.f32 %v1411_v9, %v1306_v10 }
 0x9ad   :  { %v1708_v13 = vpop.f32.mrf.mxu1 }
 0x9ae   :  { %1312 = vst [vmem:[#allocation11] sm:$0xff] %v1307_v11 }
 0x9af   :  { %v1309_v14 = vpop.f32.mrf.mxu1 }
 0x9b0   :  { %1925 = shalt.err (!%p1922_p10)
}
 0x9b1   :  { %1322 = dma.vmem_to_hbm [thread:$0]  %s1320_s11, 128, %s2104_s4, [#allocation5]   ;;  %v1709_v15 = vpop.f32.mrf.mxu1 }
 0x9b2   :  { %1940 = dma.done.wait [#allocation5], 128  }
 0x9b3   :  { %1941 = vsyncadd [#allocation5], 4294967168 }
 0x9b4   :  { %1326 = vsyncpa [#allocation4], 1 }
 0x9b5   :  { %1327 = vsyncpa [#allocation7], 1 }
 0x9b6   :  { %1328 = vsyncpa [#allocation10], 1 }
 0x9b7   :  { %1329 = vsyncpa [#allocation5], 1 }

</bundles_post_ra>
